<compile_context>
chip_gen: v7x
topology: tpu7x:2x2x1
jax: 0.10.0
libtpu: 0.0.40
codegen_flags: <defaults>
</compile_context>

<pallas_src>
import functools

import numpy as np
import jax
import jax.numpy as jnp
from jax.experimental import pallas as pl
from jax.experimental.pallas import tpu as pltpu

# ------------------------------- static sizes -------------------------------
B, C_IN, H, W = 2, 4, 16, 16
C_OUT = 8
KSZ = 3
NUM_CLASSES = 10
ETA = 0.5                       # averaging_rate (eta)
MIX_W = 0.5                     # UniformMixing weight for a 2-node graph

HW = H * W                      # 256
BHW = B * HW                    # 512
C_PAD = 8                       # channels padded to a full sublane group
B_PAD = 8                       # sublane-padded batch  -> full (8,128) out tile
N_PAD = 128                     # lane-padded class dim -> unmasked stores
W_SHIFT = W.bit_length() - 1    # 4
HW_SHIFT = HW.bit_length() - 1  # 8
assert (1 << W_SHIFT) == W and (1 << HW_SHIFT) == HW and (H & (H - 1)) == 0

# ---- parameter slab layout (aligned so kernels take static Ref slices) ------
SLAB_ROWS, SLAB_COLS = 24, 128
SLAB_SHAPE = (SLAB_ROWS, SLAB_COLS)
KKC = KSZ * KSZ * C_PAD         # 72: conv weight lanes, tap-major / channel-minor
CONV_B_LANE = KKC               # 72: conv bias lane (rows 0..C_OUT-1)
FC_W_ROW = 8                    # rows 8..15: fc weight (lanes 0..9, rest zero)
FC_B_ROW = 16                   # row 16    : fc bias   (lanes 0..9, rest zero)


# ----------------------------- spec helpers ----------------------------------
def _vmem():
    return pl.BlockSpec(memory_space=pltpu.MemorySpace.VMEM)


def _smem():
    return pl.BlockSpec(memory_space=pltpu.MemorySpace.SMEM)


# --------------------------- roll-direction probe -----------------------------
def _roll_probe_kernel(x_ref, o_ref):
    o_ref[...] = pltpu.roll(x_ref[...], 1, axis=1)


_ROLL_SIGN = None


def _get_roll_sign():
    """Empirically pin down pltpu.roll's rotation direction once (tiny one-time
    probe kernel) so the conv tap shifts are correct regardless of convention."""
    global _ROLL_SIGN
    if _ROLL_SIGN is None:
        probe = jnp.broadcast_to(jax.lax.iota(jnp.float32, 128)[None, :], (8, 128))
        out = pl.pallas_call(
            _roll_probe_kernel,
            out_shape=jax.ShapeDtypeStruct((8, 128), jnp.float32),
        )(probe)
        out = np.asarray(jax.block_until_ready(out))
        # jnp.roll convention: out[i] = in[i - shift]  =>  out[:, 1] == 0.
        _ROLL_SIGN = 1 if out[0, 1] == 0.0 else -1
    return _ROLL_SIGN


# ----------------------------- module forward body ----------------------------
def _forward_body(x, slab_ref, out_ref, roll_sign):
    """Wrapped-module forward: 3x3 SAME conv + bias + ReLU + GAP + fc.

    x        : [C_PAD, B*HW] f32 value (channels on sublanes, flat b,h,w on lanes)
    slab_ref : Ref[(24, 128)]  packed parameters (static slices are free)
    out_ref  : Ref[(B_PAD, N_PAD)] lane-dense output tile (unmasked store)
    """
    lane = jax.lax.broadcasted_iota(jnp.int32, (C_PAD, BHW), 1)
    ww = lane & (W - 1)
    hh = (lane >> W_SHIFT) & (H - 1)

    # Conv: 9 lane-rolled taps (XLU; no im2col patch inflation, no 9x DMA),
    # border-masked, accumulated as 9 [C_OUT, C_PAD] @ [C_PAD, BHW] MXU dots.
    acc = jnp.zeros((C_OUT, BHW), jnp.float32)
    for t in range(KSZ * KSZ):
        dh, dw = t // KSZ - 1, t % KSZ - 1
        off = dh * W + dw
        shift = ((-off) if roll_sign > 0 else off) % BHW
        tap = x if shift == 0 else pltpu.roll(x, shift, axis=1)
        valid = ((hh + dh >= 0) & (hh + dh < H) &
                 (ww + dw >= 0) & (ww + dw < W))
        tap = jnp.where(valid, tap, 0.0)
        w_tap = slab_ref[0:C_OUT, t * C_PAD:(t + 1) * C_PAD]       # [C_OUT, C_PAD]
        acc = acc + jnp.dot(w_tap, tap, preferred_element_type=jnp.float32)

    bias_c = slab_ref[0:C_OUT, CONV_B_LANE:CONV_B_LANE + 1]        # [C_OUT, 1]
    acc = jnp.maximum(acc + bias_c, 0.0)

    # Global-average-pool as an MXU matmul against an iota-generated selector
    # (1/(H*W) folded in) -> [C_OUT, B_PAD]; no pool-matrix operand, no DMA.
    q_idx = jax.lax.broadcasted_iota(jnp.int32, (BHW, B_PAD), 0) >> HW_SHIFT
    b_idx = jax.lax.broadcasted_iota(jnp.int32, (BHW, B_PAD), 1)
    pool = jnp.where(q_idx == b_idx, 1.0 / HW, 0.0)
    pooled = jnp.dot(acc, pool, preferred_element_type=jnp.float32)
    pooled_t = jnp.transpose(pooled)                               # 8x8 in-tile

    wf = slab_ref[FC_W_ROW:FC_W_ROW + C_OUT, :]                    # [C_OUT, 128]
    bf = slab_ref[FC_B_ROW:FC_B_ROW + 1, :]                        # [1, 128]
    out_ref[...] = jnp.dot(pooled_t, wf, preferred_element_type=jnp.float32) + bf
    # TODO(synk): when scaling B/H/W/C, add a grid over pixel/batch tiles with
    # dimension_semantics=("parallel", ...), cast matmul operands to bf16 on
    # v6e+/v7x (keep f32 accumulation), and size tiles for v7x's 64 MiB VMEM.


def _fwd_kernel(x_ref, slab_ref, out_ref, *, roll_sign):
    """Plain module forward (no gossip pending)."""
    _forward_body(x_ref[...], slab_ref, out_ref, roll_sign)


def _param_slot_mask():
    """Boolean (24,128) map of real parameter slots in the packed slab."""
    row = jax.lax.broadcasted_iota(jnp.int32, SLAB_SHAPE, 0)
    col = jax.lax.broadcasted_iota(jnp.int32, SLAB_SHAPE, 1)
    conv_ok = (row < C_OUT) & (((col < CONV_B_LANE) & ((col & (C_PAD - 1)) < C_IN))
                               | (col == CONV_B_LANE))
    fcw_ok = (row >= FC_W_ROW) & (row < FC_W_ROW + C_OUT) & (col < NUM_CLASSES)
    fcb_ok = (row == FC_B_ROW) & (col < NUM_CLASSES)
    return conv_ok | fcw_ok | fcb_ok


def _gossip_fwd_kernel(pscale_ref, x_ref, slab_ref, xj_ref, xi_ref, q_ref,
                       out_ref, slab_out, xj_out, q_out, *, roll_sign, eta, wm1):
    """Fused forward pre-hook + module forward (one pallas_call per gossip round):
    update_hats + averaged residual add + optional push-sum unbias epilogue, then
    the module forward on the freshly updated parameter slab.

    pscale_ref (SMEM, (1,)): 1/ps_weight if de-biasing, else 1.0 (computed on
    device).  eta and (mixing_weight - 1) are baked in as immediate constants."""
    p_scale = pscale_ref[0]
    # Defensive: only real parameter slots accept residuals (pad lanes stay 0).
    qm = jnp.where(_param_slot_mask(), q_ref[...], 0.0)
    xj_new = xj_ref[...] + qm                       # xj_hat += qj
    r = (xj_new + xi_ref[...] * wm1) * eta          # qj = xj_hat + (w-1)*xi_hat; *eta
    slab_new = (slab_ref[...] + r) * p_scale        # p += r ; (fused) p /= ps_weight
    slab_out[...] = slab_new
    xj_out[...] = xj_new
    q_out[...] = r
    # Module forward on the post-mix, de-biased slab (read back from the output
    # ref so weight slices stay plain static Ref windows).
    _forward_body(x_ref[...], slab_out, out_ref, roll_sign)


def _scale_kernel(scal_ref, p_ref, p_out):
    """p *= scale (standalone ps_numerator / unbias when not fused in forward)."""
    p_out[...] = p_ref[...] * scal_ref[0]


# ----------------------------- pallas_call wrappers --------------------------
_X_BYTES = 4 * C_PAD * BHW
_SLAB_BYTES = 4 * SLAB_ROWS * SLAB_COLS
_OUT_BYTES = 4 * B_PAD * N_PAD
_FWD_FLOPS = (2 * C_OUT * C_PAD * BHW * KSZ * KSZ    # conv taps
              + 2 * C_OUT * BHW * B_PAD              # pooling matmul
              + 2 * B_PAD * C_OUT * N_PAD)           # fc matmul
_FWD_COST = pl.CostEstimate(
    flops=_FWD_FLOPS, transcendentals=0,
    bytes_accessed=_X_BYTES + _SLAB_BYTES + _OUT_BYTES)
_GOSSIP_FWD_COST = pl.CostEstimate(
    flops=_FWD_FLOPS + 6 * SLAB_ROWS * SLAB_COLS, transcendentals=0,
    bytes_accessed=_X_BYTES + 7 * _SLAB_BYTES + _OUT_BYTES + 4)


def _x_to_lanes(x):
    """NCHW -> [C_PAD, B*H*W]: channels on sublanes (zero-padded to 8), flat
    b-major / (h, w)-minor pixel index on lanes."""
    xt = jnp.transpose(x, (1, 0, 2, 3)).reshape(C_IN, BHW)
    return jnp.pad(xt, ((0, C_PAD - C_IN), (0, 0)))


@functools.lru_cache(maxsize=None)
def _build_forward(roll_sign):
    call = pl.pallas_call(
        functools.partial(_fwd_kernel, roll_sign=roll_sign),
        out_shape=jax.ShapeDtypeStruct((B_PAD, N_PAD), jnp.float32),
        in_specs=[_vmem(), _vmem()],
        out_specs=_vmem(),
        cost_estimate=_FWD_COST,
    )

    @jax.jit
    def fwd(x, slab):
        return call(_x_to_lanes(x), slab)[:B, :NUM_CLASSES]

    return fwd


@functools.lru_cache(maxsize=None)
def _build_gossip_forward(roll_sign, eta, wm1, apply_unbias):
    call = pl.pallas_call(
        functools.partial(_gossip_fwd_kernel, roll_sign=roll_sign, eta=eta, wm1=wm1),
        out_shape=(jax.ShapeDtypeStruct((B_PAD, N_PAD), jnp.float32),
                   jax.ShapeDtypeStruct(SLAB_SHAPE, jnp.float32),
                   jax.ShapeDtypeStruct(SLAB_SHAPE, jnp.float32),
                   jax.ShapeDtypeStruct(SLAB_SHAPE, jnp.float32)),
        in_specs=[_smem()] + [_vmem()] * 5,
        out_specs=(_vmem(),) * 4,
        cost_estimate=_GOSSIP_FWD_COST,
    )

    @jax.jit
    def fn(x, slab, xj, xi, q, psw, gpw):
        # Push-sum scalar bookkeeping on device (no per-round host array builds).
        gpw_new = (gpw + psw * wm1) * eta
        psw_new = psw + gpw_new
        p_scale = 1.0 / psw_new if apply_unbias else jnp.ones_like(psw_new)
        out, slab_new, xj_new, q_new = call(p_scale, _x_to_lanes(x), slab, xj, xi, q)
        return out[:B, :NUM_CLASSES], slab_new, xj_new, q_new, psw_new

    return fn


def _scale_call(scale_vec, slab):
    return pl.pallas_call(
        _scale_kernel,
        out_shape=jax.ShapeDtypeStruct(SLAB_SHAPE, jnp.float32),
        in_specs=[_smem(), _vmem()],
        out_specs=_vmem(),
    )(scale_vec, slab)


_ps_numerator_jit = jax.jit(lambda psw, slab: _scale_call(psw, slab))
_unbias_jit = jax.jit(lambda psw, slab: _scale_call(1.0 / psw, slab))
_residual_jit = jax.jit(lambda p, xhat: p - xhat)


# ------------------------------ slab <-> dict --------------------------------
def flatten_params(params):
    """Pack parameters into the (24,128) aligned slab used by the kernels."""
    conv_w = params["conv_w"].astype(jnp.float32)            # [C_OUT, C_IN, k, k]
    cw = jnp.zeros((C_OUT, KSZ * KSZ, C_PAD), jnp.float32)
    cw = cw.at[:, :, :C_IN].set(
        jnp.transpose(conv_w.reshape(C_OUT, C_IN, KSZ * KSZ), (0, 2, 1)))
    cw = cw.reshape(C_OUT, KKC)
    top = jnp.zeros((8, SLAB_COLS), jnp.float32)
    top = top.at[:, :KKC].set(cw)
    top = top.at[:, CONV_B_LANE].set(params["conv_b"].astype(jnp.float32).reshape(C_OUT))
    mid = jnp.zeros((8, SLAB_COLS), jnp.float32)
    mid = mid.at[:, :NUM_CLASSES].set(params["fc_w"].astype(jnp.float32))
    bot = jnp.zeros((8, SLAB_COLS), jnp.float32)
    bot = bot.at[0, :NUM_CLASSES].set(params["fc_b"].astype(jnp.float32).reshape(NUM_CLASSES))
    return jnp.concatenate([top, mid, bot], axis=0)


def unflatten_params(slab):
    cw = slab[0:C_OUT, :KKC].reshape(C_OUT, KSZ * KSZ, C_PAD)[:, :, :C_IN]
    conv_w = jnp.transpose(cw, (0, 2, 1)).reshape(C_OUT, C_IN, KSZ, KSZ)
    return {
        "conv_w": conv_w,
        "conv_b": slab[0:C_OUT, CONV_B_LANE],
        "fc_w": slab[FC_W_ROW:FC_W_ROW + C_OUT, :NUM_CLASSES],
        "fc_b": slab[FC_B_ROW, :NUM_CLASSES],
    }


# ------------------------------ module wrapper -------------------------------
class GossipDataParallelJAX:
    """JAX/Pallas re-implementation of the GossipDataParallel forward path."""

    def __init__(self, params, eta=ETA, mixing_weight=MIX_W):
        self.eta = float(eta)
        self.mixing_weight = float(mixing_weight)
        self.is_ps_numerator = False
        self.gossip_enable = True
        self.gossiping = False
        self.params_mixed = True
        self.num_updates = 0
        self.synch_freq = 0
        self.param_slab = flatten_params(params)                     # source of truth
        self.gossip_device_buffer = self.param_slab
        self.neighbor_copy = jnp.zeros(SLAB_SHAPE, jnp.float32)      # xj_hat
        self.self_xhat = jnp.zeros(SLAB_SHAPE, jnp.float32)          # xi_hat
        self.ps_weight = jnp.ones((1,), jnp.float32)                 # on device
        self.gossip_ps_weight = jnp.ones((1,), jnp.float32)

    def get_params(self):
        return unflatten_params(self.param_slab)

    # ---- transfer_params: copy (x_i - x_i_hat) residual into gossip buffer
    def transfer_params(self):
        if not self.gossip_enable or not self.params_mixed:
            return False
        # q_i = x_i - x_i_hat; gossip-thread side then does x_i_hat += q_i which
        # is exactly x_i -> just re-point xi_hat at the slab (no kernel, no copy).
        self.gossip_device_buffer = _residual_jit(self.param_slab, self.self_xhat)
        self.self_xhat = self.param_slab
        self.params_mixed = False
        self.gossiping = True
        return True

    def simulate_neighbor_message(self, neighbor_q, neighbor_ps_weight):
        """Stand-in for gossiper.mix(): received residual + push-sum weight."""
        # TODO(synk): real multi-chip comm = pltpu.make_async_remote_copy ring.
        self.gossip_device_buffer = jnp.asarray(neighbor_q, jnp.float32)
        self.gossip_ps_weight = jnp.asarray([neighbor_ps_weight], jnp.float32)

    def ps_numerator(self):
        if not self.is_ps_numerator:
            self.param_slab = _ps_numerator_jit(self.ps_weight, self.param_slab)
            self.is_ps_numerator = True
        # TODO(synk): quasi-global momentum needs gradients; backward not implemented.

    def unbias(self):
        if self.is_ps_numerator:
            self.param_slab = _unbias_jit(self.ps_weight, self.param_slab)
            self.is_ps_numerator = False

    def scatter(self, x):
        # single logical device -> scatter_kwargs returns the whole batch chunk
        return x

    def forward(self, x):
        x = self.scatter(x)
        if self.gossip_enable and self.gossiping:
            # forward pre-hook (query gossip queue + de-bias) fused with the
            # module forward: one pallas_call per gossip round.
            fn = _build_gossip_forward(_get_roll_sign(), self.eta,
                                       self.mixing_weight - 1.0,
                                       self.is_ps_numerator)
            out, slab, xj, q, psw = fn(x, self.param_slab, self.neighbor_copy,
                                       self.self_xhat, self.gossip_device_buffer,
                                       self.ps_weight, self.gossip_ps_weight)
            self.param_slab = slab
            self.neighbor_copy = xj
            self.gossip_device_buffer = q
            self.ps_weight = psw
            self.gossip_ps_weight = psw
            self.is_ps_numerator = False      # unbias already applied in-kernel
            self.params_mixed = True
            self.gossiping = False
            self.num_updates = 0
            return out
        if self.gossip_enable:
            self.num_updates += 1
        self.unbias()
        fwd = _build_forward(_get_roll_sign())
        return fwd(x, self.param_slab)


# ------------------------------------ demo -----------------------------------
if __name__ == "__main__":
    key = jax.random.PRNGKey(0)
    k1, k2, k3, k4, kx, kq = jax.random.split(key, 6)
    params = {
        "conv_w": jax.random.normal(k1, (C_OUT, C_IN, KSZ, KSZ), jnp.float32) * 0.1,
        "conv_b": jax.random.normal(k2, (C_OUT,), jnp.float32) * 0.1,
        "fc_w": jax.random.normal(k3, (C_OUT, NUM_CLASSES), jnp.float32) * 0.1,
        "fc_b": jax.random.normal(k4, (NUM_CLASSES,), jnp.float32) * 0.1,
    }
    x = jax.random.normal(kx, (B, C_IN, H, W), jnp.float32)

    def reference_forward(prms, xin):
        hh = jax.lax.conv_general_dilated(
            xin, prms["conv_w"], (1, 1), "SAME",
            dimension_numbers=("NCHW", "OIHW", "NCHW"))
        hh = jnp.maximum(hh + prms["conv_b"].reshape(1, C_OUT, 1, 1), 0.0)
        pooled = hh.mean(axis=(2, 3))
        return pooled @ prms["fc_w"] + prms["fc_b"][None, :]

    model = GossipDataParallelJAX(params)

    # 1) plain forward (no gossip pending) -> pure forward kernel
    out0 = jax.block_until_ready(model.forward(x))
    assert out0.shape == (B, NUM_CLASSES) and out0.dtype == jnp.float32
    ref0 = reference_forward(params, x)
    np.testing.assert_allclose(np.asarray(out0), np.asarray(ref0),
                               rtol=2e-2, atol=2e-2)

    # 2) gossip round: local transfer + (simulated) neighbor residual arrives
    model.transfer_params()
    neighbor_q = jax.random.normal(kq, SLAB_SHAPE, jnp.float32) * 0.01  # unmasked
    model.simulate_neighbor_message(neighbor_q, neighbor_ps_weight=1.0)

    # snapshot pre-gossip state (host copies) for exact gossip-math checks
    slab0 = np.asarray(model.param_slab)
    xj0 = np.asarray(model.neighbor_copy)
    xi0 = np.asarray(model.self_xhat)
    q0 = np.asarray(model.gossip_device_buffer)
    psw0 = float(model.ps_weight[0])
    gpw0 = float(model.gossip_ps_weight[0])

    # fused query-gossip-queue + de-bias + module forward: one pallas_call
    out1 = jax.block_until_ready(model.forward(x))
    assert out1.shape == (B, NUM_CLASSES)

    # 3) forward again (no gossip pending): cached kernels, no recompiles
    out2 = jax.block_until_ready(model.forward(x))
    assert out2.shape == (B, NUM_CLASSES)

    # ---- reference 1: fused gossip kernel math (exact f32 elementwise)
    ones_params = {k: jnp.ones_like(v) for k, v in params.items()}
    valid = np.asarray(flatten_params(ones_params)) > 0.5   # real parameter slots
    qm = q0 * valid
    xj_ref = xj0 + qm
    r_ref = (xj_ref + (MIX_W - 1.0) * xi0) * ETA
    slab_ref = slab0 + r_ref                                 # p_scale == 1 here
    np.testing.assert_allclose(np.asarray(model.neighbor_copy), xj_ref,
                               rtol=1e-6, atol=1e-6)
    np.testing.assert_allclose(np.asarray(model.gossip_device_buffer), r_ref,
                               rtol=1e-6, atol=1e-6)
    np.testing.assert_allclose(np.asarray(model.param_slab), slab_ref,
                               rtol=1e-6, atol=1e-6)
    gpw_ref = (gpw0 + psw0 * (MIX_W - 1.0)) * ETA
    psw_ref = psw0 + gpw_ref
    np.testing.assert_allclose(float(model.ps_weight[0]), psw_ref, rtol=1e-6)
    np.testing.assert_allclose(float(model.gossip_ps_weight[0]), psw_ref, rtol=1e-6)

    # ---- reference 2: module forward with post-gossip params via XLA conv.
    # Tolerance covers MXU default-precision (bf16-pass) matmuls on both sides.
    ref1 = reference_forward(model.get_params(), x)
    np.testing.assert_allclose(np.asarray(out1), np.asarray(ref1),
                               rtol=2e-2, atol=2e-2)
    np.testing.assert_allclose(np.asarray(out2), np.asarray(ref1),
                               rtol=2e-2, atol=2e-2)

    print("KERNEL_OK")
</pallas_src>

<mosaic_0001>
module attributes {stable_mosaic.version = 11 : i64} {
  func.func @_roll_probe_kernel(%arg0: memref<8x128xf32, #tpu.memory_space<vmem>>, %arg1: memref<8x128xf32, #tpu.memory_space<vmem>>) attributes {dimension_semantics = [], scalar_prefetch = 0 : i64, scratch_operands = 0 : i64, tpu.core_type = #tpu.core_type<tc>} {
    %c0 = arith.constant 0 : index
    %c0_0 = arith.constant 0 : index
    %0 = vector.load %arg0[%c0, %c0_0] : memref<8x128xf32, #tpu.memory_space<vmem>>, vector<8x128xf32>
    %c1_i32 = arith.constant 1 : i32
    %1 = tpu.dynamic_rotate %0 by %c1_i32 dim 1 : vector<8x128xf32>, i32 -> vector<8x128xf32>
    %c0_1 = arith.constant 0 : index
    %c0_2 = arith.constant 0 : index
    %2 = vector.load %arg1[%c0_1, %c0_2] : memref<8x128xf32, #tpu.memory_space<vmem>>, vector<8x128xf32>
    tpu.vector_store %arg1[%c0_1, %c0_2], %1 {strides = array<i32>} : memref<8x128xf32, #tpu.memory_space<vmem>>, vector<8x128xf32>,
    return
  }
}

</mosaic_0001>

<bundles_post_ra>
// kernel: tpu_custom_call.1
= control target key start
LH: loop header
LB: loop body
LE: loop exit
PB: predicated region body
PF: predicated region fallthrough
CT: control target
= control target key end

     0   :  { %6 = vsyncpa [#allocation3], 0  ;;  %s128_s0 = inlined_call_operand.hbm [shape: f32[8,128], index: 0, kind: input, shape index: {}]   ;;  %s129_s1 = inlined_call_operand.hbm [shape: f32[8,128], index: 1, kind: output, shape index: {}]  }
   0x1   :  { %7 = vsyncpa [#allocation4], 0  ;;  %s91_s6 = smov [#allocation2]   ;;  %s43_s10 = scalar_lea.hbm %s128_s0, 128 }
   0x2   :  { %s14_s7 = sshll.u32 %s91_s6, 4  ;;  %p44_p0 = scmp.ne.s32.totalorder %s128_s0, %s43_s10  ;;  %s15_s7 = int_to_ptr.vmem [resolvable:$true] %s14_s7 }
   0x3   :  { %p47_p1 = scmp.lt.u32.totalorder %s43_s10, %s128_s0 }
   0x5   :  { %p49_p2 = pnand %p47_p1, %p44_p0 }
   0x7   :  { %52 = shalt.err (!%p49_p2)
}
   0x8   :  { %s53_s15 = scalar_lea.vmem %s15_s7, 128  ;;  %p58_p4 = scmp.lt.s32.totalorder %s15_s7, %s15_s7 }
   0x9   :  { %p54_p3 = scmp.ne.s32.totalorder %s15_s7, %s53_s15  ;;  %p59_p5 = scmp.lt.s32.totalorder %s53_s15, %s53_s15 }
   0xb   :  { %p60_p6 = por %p59_p5, %p58_p4 }
   0xd   :  { %p61_p7 = pnand %p60_p6, %p54_p3 }
   0xf   :  { %64 = shalt.err (!%p61_p7)
}
  0x10   :  { %17 = dma.hbm_to_vmem [thread:$0]  %s128_s0, 128, %s15_s7, [#allocation3]  }
  0x11   :  { %87 = dma.done.wait [#allocation3], 128  }
  0x12   :  { %88 = vsyncadd [#allocation3], 4294967168  ;;  %v21_v0 = vld [vmem:[#allocation2] sm:$0xff]  ;;  %s92_s18 = smov 1   ;;  %s93_s19 = smov [#allocation5]  }
  0x13   :  { %22 = vrot.lane.b32.xlu0 %v21_v0, %s92_s18  ;;  %s31_s20 = sshll.u32 %s93_s19, 4  ;;  %s32_s20 = int_to_ptr.vmem [resolvable:$true] %s31_s20 }
  0x14   :  { %s65_s21 = scalar_lea.vmem %s32_s20, 128  ;;  %p70_p9 = scmp.lt.s32.totalorder %s32_s20, %s32_s20 }
  0x15   :  { %p66_p8 = scmp.ne.s32.totalorder %s32_s20, %s65_s21  ;;  %p71_p10 = scmp.lt.s32.totalorder %s65_s21, %s65_s21 }
  0x17   :  { %p72_p11 = por %p71_p10, %p70_p9 }
  0x19   :  { %p73_p12 = pnand %p72_p11, %p66_p8 }
  0x85   :  { %v23_v1 = vpop.permute.xlu0 %22 }
  0x86   :  { %24 = vst [vmem:[#allocation5] sm:$0xff] %v23_v1 }
  0x87   :  { %76 = shalt.err (!%p73_p12)
}
  0x88   :  { %s77_s0 = scalar_lea.hbm %s129_s1, 128 }
  0x89   :  { %p78_p13 = scmp.ne.s32.totalorder %s129_s1, %s77_s0  ;;  %p81_p0 = scmp.lt.u32.totalorder %s77_s0, %s129_s1 }
  0x8b   :  { %p83_p1 = pnand %p81_p0, %p78_p13 }
  0x8d   :  { %86 = shalt.err (!%p83_p1)
}
  0x8e   :  { %34 = dma.vmem_to_hbm [thread:$0]  %s32_s20, 128, %s129_s1, [#allocation4]  }
  0x8f   :  { %89 = dma.done.wait [#allocation4], 128  }
  0x90   :  { %90 = vsyncadd [#allocation4], 4294967168 }
  0x91   :  { %38 = vsyncpa [#allocation3], 1 }
  0x92   :  { %39 = vsyncpa [#allocation4], 1 }

</bundles_post_ra>
